<compile_context>
chip_gen: v7x
topology: tpu7x:2x2x1
jax: 0.10.0
libtpu: 0.0.40
codegen_flags: <defaults>
</compile_context>

<pallas_src>
import jax
import jax.numpy as jnp
from jax.experimental import pallas as pl
from jax.experimental.pallas import tpu as pltpu


def _choose_b_tile(B, L, target_rows=1024):
    """Largest batch tile that (a) divides B, (b) keeps (b_tile, L) blocks
    sublane-aligned (multiple of 8 rows) unless it spans the whole batch, and
    (c) keeps b_tile*L at or under ~target_rows rows per grid step."""
    candidates = [d for d in range(1, B + 1)
                  if B % d == 0 and (d % 8 == 0 or d == B)]
    under = [d for d in candidates if d * L <= target_rows]
    return max(under) if under else min(candidates)


def _make_kernel(num_layers, cout_list, b_tile, L):
    # ref order: x2d_block, w'_0 ... w'_{num_layers-1}, shifts_packed, mask_block, out_block
    def kernel(*refs):
        x_ref = refs[0]                            # (b_tile*L, C_in)
        w_refs = refs[1:1 + num_layers]            # resident folded weights
        shifts_ref = refs[1 + num_layers]          # (1, total_cout), resident
        mask_ref = refs[2 + num_layers]            # (b_tile, L)
        out_ref = refs[3 + num_layers]             # (b_tile, L)

        h = x_ref[...]                             # f32, rows = b_tile*L
        off = 0
        for l in range(num_layers):
            cout = cout_list[l]
            # Conv1d(kernel_size=1, bias=False) with BN scale pre-folded into w'.
            h = jnp.dot(h, w_refs[l][...], preferred_element_type=jnp.float32)
            # BN shift (static lane-slice of the packed shift buffer), then ReLU.
            h = h + shifts_ref[:, off:off + cout]  # (1, cout) broadcasts over rows
            h = jnp.maximum(h, 0.0)
            off += cout

        # permute(0,2,1) + adaptive_max_pool1d(.,1) == max over the channel axis.
        # (rows, C_last) -> (b_tile, L, C_last) keeps C_last in lanes (sublane split).
        h3 = h.reshape(b_tile, L, cout_list[-1])
        pooled = jnp.max(h3, axis=-1)              # (b_tile, L)

        # softmax over the last dim (action2_dim).  Reciprocal on the EUP
        # (approx) + one Newton step to stay within the 1e-5 tolerance.
        m = jnp.max(pooled, axis=-1, keepdims=True)
        e = jnp.exp(pooled - m)
        denom = jnp.sum(e, axis=-1, keepdims=True)
        inv = pl.reciprocal(denom, approx=True)
        inv = inv * (2.0 - denom * inv)            # Newton refinement (~f32 exact)
        out_ref[...] = (e * inv) * mask_ref[...]   # torch.mul(softmax, mask)
    return kernel


def actor2_arm_conv_pallas(x_ncl, mask, w_list, scale_list, shift_list, *, b_tile=None):
    """x_ncl: (B, C_in, L) float32 (PyTorch NCL). mask: (B, L). Returns (B, L)."""
    B, C_in, L = x_ncl.shape
    num_layers = len(w_list)
    cout_list = [int(w.shape[1]) for w in w_list]
    total_cout = sum(cout_list)

    if b_tile is None:
        b_tile = _choose_b_tile(B, L)
    assert B % b_tile == 0, "batch tile must divide the batch"
    num_blocks = B // b_tile
    rows = b_tile * L
    # Keep the (rows, C) <-> (b_tile, L, C) reshape a pure sublane-axis split
    # (and the x/mask/out block shapes tile-legal) for any gridded configuration.
    assert rows % 8 == 0 or num_blocks == 1, "b_tile*L must be a multiple of 8 when gridded"

    # Per-step VMEM budget: double-buffered x/mask/out blocks + resident weights
    # + widest live intermediate.  Must stay under v5e's 16 MiB default scoped
    # VMEM (v6e/v7x default 32 MiB), which it does by a wide margin here.
    bytes_per_step = 4 * (
        2 * rows * C_in                                   # x block (double-buffered)
        + 4 * b_tile * L                                  # mask + out blocks
        + sum(int(w.shape[0]) * int(w.shape[1]) for w in w_list)
        + total_cout
        + 2 * rows * max(cout_list)                       # intermediate headroom
    )
    assert bytes_per_step < 16 * 1024 * 1024, "block too large for v5e scoped VMEM"

    # NCL -> NLC -> (B*L, C_in): each Conv1d(k=1) becomes a dense 2-D matmul.
    # (Single XLA copy; for large B produce x in NLC upstream instead.)
    x2d = jnp.transpose(x_ncl, (0, 2, 1)).astype(jnp.float32).reshape(B * L, C_in)

    args = [x2d]
    for w, s in zip(w_list, scale_list):
        # Fold the BN scale into the weights on the host.
        args.append(w.astype(jnp.float32) * s.astype(jnp.float32)[None, :])
    # Pack all BN shifts into a single (1, total_cout) buffer.
    shifts_packed = jnp.concatenate(
        [b.astype(jnp.float32).reshape(-1) for b in shift_list]).reshape(1, -1)
    args.append(shifts_packed)
    args.append(mask.astype(jnp.float32))

    in_specs = [pl.BlockSpec((rows, C_in), lambda i: (i, 0))]            # x: batch-gridded
    for w in w_list:
        in_specs.append(pl.BlockSpec(tuple(int(d) for d in w.shape),
                                     lambda i: (0, 0)))                  # weights: resident
    in_specs.append(pl.BlockSpec((1, total_cout), lambda i: (0, 0)))     # shifts: resident
    in_specs.append(pl.BlockSpec((b_tile, L), lambda i: (i, 0)))         # mask: batch-gridded

    grid_spec = pltpu.PrefetchScalarGridSpec(
        num_scalar_prefetch=0,
        grid=(num_blocks,),
        in_specs=in_specs,
        out_specs=pl.BlockSpec((b_tile, L), lambda i: (i, 0)),
    )

    kernel = _make_kernel(num_layers, cout_list, b_tile, L)
    out = pl.pallas_call(
        kernel,
        out_shape=jax.ShapeDtypeStruct((B, L), jnp.float32),
        grid_spec=grid_spec,
        compiler_params=pltpu.CompilerParams(
            dimension_semantics=("parallel",)),      # v7x dual-TC; no-op on v5e/v6e
    )(*args)
    return out


def actor2_arm_conv_ref(x_ncl, mask, w_list, scale_list, shift_list):
    h = jnp.transpose(x_ncl, (0, 2, 1)).astype(jnp.float32)
    for w, s, b in zip(w_list, scale_list, shift_list):
        h = jnp.einsum('blc,co->blo', h, w) * s.reshape(1, 1, -1) + b.reshape(1, 1, -1)
        h = jnp.maximum(h, 0.0)
    pooled = jnp.max(h, axis=-1)
    sm = jax.nn.softmax(pooled, axis=-1)
    return sm * mask


if __name__ == "__main__":
    key = jax.random.PRNGKey(0)

    B = 2
    shared_output_dim = 16       # C_in
    arm_list = [32, 64]          # hidden conv channels
    action2_dim = 8              # sequence length L must equal action2_dim
    L = action2_dim
    eps = 1e-5

    keys = jax.random.split(key, 2 + len(arm_list))
    kx, km, kws = keys[0], keys[1], keys[2:]

    # PyTorch-style NCL input and {0,1} mask
    x = jax.random.normal(kx, (B, shared_output_dim, L), jnp.float32)
    mask = (jax.random.uniform(km, (B, L)) > 0.3).astype(jnp.float32)

    # Deterministic parameter init (Conv1d weight (Cout,Cin,1) stored transposed as (Cin,Cout))
    w_list, scale_list, shift_list = [], [], []
    cin = shared_output_dim
    for l, cout in enumerate(arm_list):
        w = jax.random.normal(kws[l], (cin, cout), jnp.float32) / jnp.sqrt(cin)
        gamma = jnp.ones((cout,), jnp.float32)
        beta = jnp.zeros((cout,), jnp.float32)
        running_mean = jnp.zeros((cout,), jnp.float32)
        running_var = jnp.ones((cout,), jnp.float32)
        scale = gamma / jnp.sqrt(running_var + eps)
        shift = beta - running_mean * scale
        w_list.append(w)
        scale_list.append(scale)
        shift_list.append(shift)
        cin = cout

    out = actor2_arm_conv_pallas(x, mask, w_list, scale_list, shift_list)
    out = jax.block_until_ready(out)

    ref = actor2_arm_conv_ref(x, mask, w_list, scale_list, shift_list)
    assert out.shape == (B, action2_dim)
    assert bool(jnp.allclose(out, ref, atol=1e-5, rtol=1e-5)), "mismatch vs JAX reference"

    print("KERNEL_OK")
</pallas_src>

<mosaic_0001>
module attributes {stable_mosaic.version = 11 : i64} {
  func.func @kernel(%arg0: i32, %arg1: memref<16x16xf32, #tpu.memory_space<vmem>>, %arg2: memref<16x32xf32, #tpu.memory_space<vmem>>, %arg3: memref<32x64xf32, #tpu.memory_space<vmem>>, %arg4: memref<1x96xf32, #tpu.memory_space<vmem>>, %arg5: memref<2x8xf32, #tpu.memory_space<vmem>>, %arg6: memref<2x8xf32, #tpu.memory_space<vmem>>) attributes {dimension_semantics = [#tpu.dimension_semantics<parallel>], iteration_bounds = array<i64: 1>, scalar_prefetch = 0 : i64, scratch_operands = 0 : i64, tpu.core_type = #tpu.core_type<tc>, window_params = [{transform_indices = @transform_0, window_bounds = array<i64: 16, 16>}, {pipeline_mode = #tpu.pipeline_mode<synchronous>, transform_indices = @transform_1, window_bounds = array<i64: 16, 32>}, {pipeline_mode = #tpu.pipeline_mode<synchronous>, transform_indices = @transform_2, window_bounds = array<i64: 32, 64>}, {pipeline_mode = #tpu.pipeline_mode<synchronous>, transform_indices = @transform_3, window_bounds = array<i64: 1, 96>}, {transform_indices = @transform_4, window_bounds = array<i64: 2, 8>}, {transform_indices = @transform_5, window_bounds = array<i64: 2, 8>}]} {
    %c0 = arith.constant 0 : index
    %c0_0 = arith.constant 0 : index
    %0 = vector.load %arg1[%c0, %c0_0] : memref<16x16xf32, #tpu.memory_space<vmem>>, vector<16x16xf32>
    %c0_1 = arith.constant 0 : index
    %c0_2 = arith.constant 0 : index
    %1 = vector.load %arg2[%c0_1, %c0_2] : memref<16x32xf32, #tpu.memory_space<vmem>>, vector<16x32xf32>
    %cst = arith.constant dense<0.000000e+00> : vector<16x32xf32>
    %2 = tpu.matmul %0, %1, %cst {dimension_numbers = #tpu.dot_dimension_numbers<[1], [0], [0], [1], [0, 0, 1, 1], [], []>} : vector<16x16xf32>, vector<16x32xf32>, vector<16x32xf32> -> vector<16x32xf32>
    %c0_3 = arith.constant 0 : index
    %c0_4 = arith.constant 0 : index
    %3 = vector.load %arg4[%c0_3, %c0_4] : memref<1x96xf32, #tpu.memory_space<vmem>>, vector<1x32xf32>
    %4 = vector.broadcast %3 : vector<1x32xf32> to vector<16x32xf32>
    %5 = arith.addf %2, %4 : vector<16x32xf32>
    %cst_5 = arith.constant 0.000000e+00 : f32
    %6 = vector.broadcast %cst_5 : f32 to vector<16x32xf32>
    %7 = arith.maximumf %5, %6 : vector<16x32xf32>
    %c0_6 = arith.constant 0 : index
    %c0_7 = arith.constant 0 : index
    %8 = vector.load %arg3[%c0_6, %c0_7] : memref<32x64xf32, #tpu.memory_space<vmem>>, vector<32x64xf32>
    %cst_8 = arith.constant dense<0.000000e+00> : vector<16x64xf32>
    %9 = tpu.matmul %7, %8, %cst_8 {dimension_numbers = #tpu.dot_dimension_numbers<[1], [0], [0], [1], [0, 0, 1, 1], [], []>} : vector<16x32xf32>, vector<32x64xf32>, vector<16x64xf32> -> vector<16x64xf32>
    %c0_9 = arith.constant 0 : index
    %c32 = arith.constant 32 : index
    %10 = vector.load %arg4[%c0_9, %c32] : memref<1x96xf32, #tpu.memory_space<vmem>>, vector<1x64xf32>
    %11 = vector.broadcast %10 : vector<1x64xf32> to vector<16x64xf32>
    %12 = arith.addf %9, %11 : vector<16x64xf32>
    %cst_10 = arith.constant 0.000000e+00 : f32
    %13 = vector.broadcast %cst_10 : f32 to vector<16x64xf32>
    %14 = arith.maximumf %12, %13 : vector<16x64xf32>
    %15 = vector.shape_cast %14 : vector<16x64xf32> to vector<2x8x64xf32>
    %cst_11 = arith.constant dense<0xFF800000> : vector<2x8xf32>
    %16 = vector.multi_reduction <maximumf>, %15, %cst_11 [2] : vector<2x8x64xf32> to vector<2x8xf32>
    %cst_12 = arith.constant dense<0xFF800000> : vector<2xf32>
    %17 = vector.multi_reduction <maximumf>, %16, %cst_12 [1] : vector<2x8xf32> to vector<2xf32>
    %18 = vector.shape_cast %17 : vector<2xf32> to vector<2x1xf32>
    %19 = vector.broadcast %18 : vector<2x1xf32> to vector<2x8xf32>
    %20 = arith.subf %16, %19 : vector<2x8xf32>
    %21 = math.exp %20 : vector<2x8xf32>
    %cst_13 = arith.constant dense<0.000000e+00> : vector<2xf32>
    %22 = vector.multi_reduction <add>, %21, %cst_13 [1] : vector<2x8xf32> to vector<2xf32>
    %23 = vector.shape_cast %22 : vector<2xf32> to vector<2x1xf32>
    %24 = tpu.reciprocal %23 {approx = true} : vector<2x1xf32> -> vector<2x1xf32>
    %25 = arith.mulf %23, %24 : vector<2x1xf32>
    %cst_14 = arith.constant 2.000000e+00 : f32
    %26 = vector.broadcast %cst_14 : f32 to vector<2x1xf32>
    %27 = arith.subf %26, %25 : vector<2x1xf32>
    %28 = arith.mulf %24, %27 : vector<2x1xf32>
    %29 = vector.broadcast %28 : vector<2x1xf32> to vector<2x8xf32>
    %30 = arith.mulf %21, %29 : vector<2x8xf32>
    %c0_15 = arith.constant 0 : index
    %c0_16 = arith.constant 0 : index
    %31 = vector.load %arg5[%c0_15, %c0_16] : memref<2x8xf32, #tpu.memory_space<vmem>>, vector<2x8xf32>
    %32 = arith.mulf %30, %31 : vector<2x8xf32>
    %c0_17 = arith.constant 0 : index
    %c0_18 = arith.constant 0 : index
    %33 = vector.load %arg6[%c0_17, %c0_18] : memref<2x8xf32, #tpu.memory_space<vmem>>, vector<2x8xf32>
    tpu.vector_store %arg6[%c0_17, %c0_18], %32 {strides = array<i32>} : memref<2x8xf32, #tpu.memory_space<vmem>>, vector<2x8xf32>,
    return
  }
  func.func @transform_0(%arg0: i32) -> (i32, i32) {
    %c0_i32 = arith.constant 0 : i32
    %c0_i32_0 = arith.constant 0 : i32
    return %arg0, %c0_i32 : i32, i32
  }
  func.func @transform_1(%arg0: i32) -> (i32, i32) {
    %c0_i32 = arith.constant 0 : i32
    %c0_i32_0 = arith.constant 0 : i32
    %c0_i32_1 = arith.constant 0 : i32
    return %c0_i32, %c0_i32_0 : i32, i32
  }
  func.func @transform_2(%arg0: i32) -> (i32, i32) {
    %c0_i32 = arith.constant 0 : i32
    %c0_i32_0 = arith.constant 0 : i32
    %c0_i32_1 = arith.constant 0 : i32
    return %c0_i32, %c0_i32_0 : i32, i32
  }
  func.func @transform_3(%arg0: i32) -> (i32, i32) {
    %c0_i32 = arith.constant 0 : i32
    %c0_i32_0 = arith.constant 0 : i32
    %c0_i32_1 = arith.constant 0 : i32
    return %c0_i32, %c0_i32_0 : i32, i32
  }
  func.func @transform_4(%arg0: i32) -> (i32, i32) {
    %c0_i32 = arith.constant 0 : i32
    %c0_i32_0 = arith.constant 0 : i32
    return %arg0, %c0_i32 : i32, i32
  }
  func.func @transform_5(%arg0: i32) -> (i32, i32) {
    %c0_i32 = arith.constant 0 : i32
    %c0_i32_0 = arith.constant 0 : i32
    return %arg0, %c0_i32 : i32, i32
  }
}

</mosaic_0001>

<bundles_post_ra>
// kernel: tpu_custom_call.1
= control target key start
LH: loop header
LB: loop body
LE: loop exit
PB: predicated region body
PF: predicated region fallthrough
CT: control target
= control target key end

     0   :  { %10 = vsyncpa [#allocation3], 0  ;;  %s661_s0 = inlined_call_operand.hbm [shape: f32[16,16], index: 0, kind: input, shape index: {}]   ;;  %s662_s1 = inlined_call_operand.hbm [shape: f32[16,32], index: 1, kind: input, shape index: {}]   ;;  %s663_s2 = inlined_call_operand.hbm [shape: f32[32,64], index: 2, kind: input, shape index: {}]   ;;  %s664_s3 = inlined_call_operand.vmem [shape: f32[1,96], index: 3, kind: input, shape index: {}]   ;;  %s665_s4 = inlined_call_operand.vmem [shape: f32[2,8], index: 4, kind: input, shape index: {}]   ;;  %s666_s5 = inlined_call_operand.hbm [shape: f32[2,8], index: 5, kind: output, shape index: {}]  }
   0x1   :  { %11 = vsyncpa [#allocation6], 0 }
   0x2   :  { %12 = vsyncpa [#allocation4], 0  ;;  %s539_s18 = smov [#allocation5]   ;;  %s540_s20 = smov [#allocation2]  }
   0x3   :  { %s30_s19 = sshll.u32 %s539_s18, 4  ;;  %s18_s21 = sshll.u32 %s540_s20, 4  ;;  %s31_s19 = int_to_ptr.vmem [resolvable:$true] %s30_s19  ;;  %s577_s21 = int_to_ptr.vmem [resolvable:$true] %s18_s21 }
   0x4   :  { %s445_s24 = scalar_lea.hbm %s662_s1, 256 }
   0x5   :  { %p446_p0 = scmp.ne.s32.totalorder %s662_s1, %s445_s24  ;;  %p449_p1 = scmp.lt.u32.totalorder %s445_s24, %s662_s1 }
   0x7   :  { %p451_p2 = pnand %p449_p1, %p446_p0 }
   0x9   :  { %454 = shalt.err (!%p451_p2)
}
   0xa   :  { %s455_s29 = scalar_lea.vmem %s31_s19, 256  ;;  %p460_p4 = scmp.lt.s32.totalorder %s31_s19, %s31_s19 }
   0xb   :  { %p456_p3 = scmp.ne.s32.totalorder %s31_s19, %s455_s29  ;;  %p461_p5 = scmp.lt.s32.totalorder %s455_s29, %s455_s29 }
   0xd   :  { %p462_p6 = por %p461_p5, %p460_p4 }
   0xf   :  { %p463_p7 = pnand %p462_p6, %p456_p3 }
  0x11   :  { %466 = shalt.err (!%p463_p7)
}
  0x12   :  { %s541_s30 = smov 128   ;;  %s542_s6 = smov 8  }
  0x13   :  { %36 = dma.hbm_to_vmem [thread:$0]  %s662_s1, 256, %s31_s19, [#allocation6], %s541_s30, %s541_s30, %s542_s6  }
  0x14   :  { %s467_s11 = scalar_lea.hbm %s661_s0, 256 }
  0x15   :  { %p468_p8 = scmp.ne.s32.totalorder %s661_s0, %s467_s11  ;;  %p471_p9 = scmp.lt.u32.totalorder %s467_s11, %s661_s0 }
  0x17   :  { %p473_p10 = pnand %p471_p9, %p468_p8 }
  0x19   :  { %476 = shalt.err (!%p473_p10)
}
  0x1a   :  { %s477_s16 = scalar_lea.vmem %s577_s21, 256  ;;  %p482_p12 = scmp.lt.s32.totalorder %s577_s21, %s577_s21 }
  0x1b   :  { %p478_p11 = scmp.ne.s32.totalorder %s577_s21, %s477_s16  ;;  %p483_p13 = scmp.lt.s32.totalorder %s477_s16, %s477_s16 }
  0x1d   :  { %p484_p0 = por %p483_p13, %p482_p12 }
  0x1f   :  { %p485_p1 = pnand %p484_p0, %p478_p11 }
  0x21   :  { %488 = shalt.err (!%p485_p1)
}
  0x22   :  { %24 = dma.hbm_to_vmem [thread:$0]  %s661_s0, 256, %s577_s21, [#allocation3], %s541_s30, %s541_s30, %s542_s6  }
  0x23   :  { %s543_s18 = smov [#allocation7]   ;;  %s489_s23 = scalar_lea.hbm %s663_s2, 512 }
  0x24   :  { %s42_s19 = sshll.u32 %s543_s18, 4  ;;  %p490_p2 = scmp.ne.s32.totalorder %s663_s2, %s489_s23  ;;  %s43_s19 = int_to_ptr.vmem [resolvable:$true] %s42_s19 }
  0x25   :  { %p493_p3 = scmp.lt.u32.totalorder %s489_s23, %s663_s2 }
  0x27   :  { %p495_p4 = pnand %p493_p3, %p490_p2 }
  0x29   :  { %498 = shalt.err (!%p495_p4)
}
  0x2a   :  { %s499_s28 = scalar_lea.vmem %s43_s19, 512  ;;  %p504_p6 = scmp.lt.s32.totalorder %s43_s19, %s43_s19 }
  0x2b   :  { %p500_p5 = scmp.ne.s32.totalorder %s43_s19, %s499_s28  ;;  %p505_p7 = scmp.lt.s32.totalorder %s499_s28, %s499_s28 }
  0x2d   :  { %p506_p8 = por %p505_p7, %p504_p6 }
  0x2f   :  { %p507_p9 = pnand %p506_p8, %p500_p5 }
  0x31   :  { %510 = shalt.err (!%p507_p9)
}
  0x32   :  { %48 = dma.hbm_to_vmem [thread:$0]  %s663_s2, 512, %s43_s19, [#allocation6], %s541_s30, %s541_s30, %s542_s6  }
  0x33   :  { %533 = dma.done.wait [#allocation3], 256  }
  0x34   :  { %534 = vsyncadd [#allocation3], 4294967040 }
  0x35   :  { %535 = dma.done.wait [#allocation6], 768  }
  0x36   :  { %536 = vsyncadd [#allocation6], 4294966528  ;;  %vm73_vm0 = vcmask 130048   ;;  %v64_v0 = vld [vmem:[#allocation5] sm:$0xff]  ;;  %v65_v1 = vld [vmem:[#allocation5 + $0x8] sm:$0xff]  ;;  %s544_s30 = smov 96   ;;  %v257_v27 = vlaneseq }
  0x37   :  { %v62_v2 = vld [vmem:[#allocation2] sm:$0xff]  ;;  %v417_v3 = vpack.c.bf16 %v65_v1, %v64_v0  ;;  %v158_v5 = vld [vmem:[#allocation7 + $0x8] sm:$0xff]  ;;  %v159_v8 = vld [vmem:[#allocation7 + $0x10] sm:$0xff]  ;;  %vm164_vm1 = vcmask 261120   ;;  %vm248_vm2 = vcmask 523264   ;;  %vm267_vm3 = vcmask 1041409  }
  0x38   :  { %403 = vmatprep.mubr.msk.f32.mxu0 %vm73_vm0, %v62_v2  ;;  %v157_v4 = vld [vmem:[#allocation7] sm:$0xff]  ;;  %v63_v7 = vld [vmem:[#allocation2 + $0x8] sm:$0xff]  ;;  %v160_v9 = vld [vmem:[#allocation7 + $0x18] sm:$0xff]  ;;  %v258_v28 = vand.u32 127, %v257_v27  ;;  %v260_v29 = vshrl.u32 %v257_v27, 7  ;;  %vm270_vm4 = vcmask 58368  }
  0x39   :  { %v421_v6 = vpack.c.bf16 %v158_v5, %v157_v4  ;;  %418 = vmatprep.subr.bf16.mxu0 %v417_v3  ;;  %v425_v10 = vpack.c.bf16 %v160_v9, %v159_v8  ;;  %v384_v11 = vld [vmem:[%s664_s3] ss:$0 sm:$0xff]  ;;  %v545_v37 = vmov 0  }
  0x3a   :  { %420 = vmatpush3.bf16.msra.mxu0 %v417_v3  ;;  %161 = vrot.lane.b32.xlu0 %v384_v11, %s544_s30  ;;  %v632_v30 = vsub.s32 %v258_v28, %v260_v29  ;;  %v277_v38 = vsub.s32 0, %v260_v29  ;;  %v281_v39 = vsub.s32 1, %v260_v29  ;;  %v329_v49 = vld [vmem:[%s665_s4] sm:$0x3]  ;;  %s546_s4 = smov [#allocation8]  }
  0x3b   :  { %422 = vmatprep.subr.bf16.mxu1 %v421_v6  ;;  %437 = vset.pattern.permute.xlu1 %v545_v37  ;;  %s374_s7 = sshll.u32 %s546_s4, 4  ;;  %s375_s7 = int_to_ptr.vmem [resolvable:$true] %s374_s7 }
  0x3c   :  { %424 = vmatpush3.bf16.msra.mxu1 %v421_v6  ;;  %438 = vset.pattern.permute.xlu0 %v545_v37  ;;  %v334_v50 = vrot.slane %v329_v49, %v277_v38  ;;  %v341_v51 = vrot.slane %v329_v49, %v281_v39  ;;  %s511_s8 = scalar_lea.vmem %s375_s7, 32  ;;  %p516_p11 = scmp.lt.s32.totalorder %s375_s7, %s375_s7 }
  0x3d   :  { %404 = vmatmul.mubr.msk.f32.vlgmr.msra.gmra.mrb[0].mxu0 %vm73_vm0, %v63_v7  ;;  %426 = vmatprep.subr.bf16.mxu1 %v425_v10  ;;  %p512_p10 = scmp.ne.s32.totalorder %s375_s7, %s511_s8  ;;  %p517_p12 = scmp.lt.s32.totalorder %s511_s8, %s511_s8 }
  0x3f   :  { %p518_p13 = por %p517_p12, %p516_p11 }
  0x40   :  { %428 = vmatpush3.bf16.msra.mxu1 %v425_v10 }
  0x41   :  { %p519_p0 = pnand %p518_p13, %p512_p10 }
  0xac   :  { %v162_v18 = vpop.permute.xlu0 %161 }
 0x110   :  { %v405_v12 = vpop.f32.mrb[0].mxu0 }
 0x111   :  { %v152_v13 = vadd.f32 %v405_v12, %v384_v11  ;;  %v146_v14 = vpop.f32.mrb[1].mxu0 }
 0x112   :  { %v147_v15 = vadd.f32 %v384_v11, %v146_v14 }
 0x113   :  { %v156_v17 = vmax.f32 %v152_v13, 0.0 }
 0x114   :  { %v155_v16 = vmax.f32 %v147_v15, 0.0 }
 0x116   :  { %414 = vmatprep.mubr.msk.f32.mxu1 %vm164_vm1, %v155_v16 }
 0x117   :  { %415 = vmatmul.mubr.msk.f32.vlgmr.msra.gmra.mrb[0].mxu1 %vm164_vm1, %v156_v17 }
 0x1ea   :  { %v416_v19 = vpop.f32.mrb[0].mxu1 }
 0x1eb   :  { %v243_v20 = vadd.f32 %v416_v19, %v162_v18  ;;  %v237_v21 = vpop.f32.mrb[1].mxu1 }
 0x1ec   :  { %v238_v22 = vadd.f32 %v237_v21, %v162_v18 }
 0x1ed   :  { %v247_v23 = vmax.f32 %v243_v20, 0.0 }
 0x1ee   :  { %v246_v24 = vmax.f32 %v238_v22, 0.0 }
 0x1ef   :  { %v252_v25 = vsel %vm248_vm2, %v247_v23, -inf }
 0x1f0   :  { %253 = vmax.xlane.f32.xlu1 %v252_v25  ;;  %v249_v26 = vsel %vm248_vm2, %v246_v24, -inf }
 0x1f1   :  { %250 = vmax.xlane.f32.xlu0 %v249_v26 }
 0x207   :  { %336 = vbcast.lane.b32.xlu0 %v334_v50, 256 }
 0x20b   :  { %343 = vbcast.lane.b32.xlu0 %v341_v51, 256 }
 0x27d   :  { %v254_v31 = vpop.xlane.xlu1 %253 }
 0x27e   :  { %v266_v32 = vrot.slane %v254_v31, %v632_v30  ;;  %v251_v33 = vpop.xlane.xlu0 %250 }
 0x27f   :  { %v262_v34 = vrot.slane %v251_v33, %v632_v30 }
 0x281   :  { %v268_v35 = vsel %vm267_vm3, %v266_v32, %v262_v34 }
 0x282   :  { %v271_v36 = vsel %vm270_vm4, %v268_v35, -inf  ;;  %v337_v61 = vpop.permute.xlu0 %336 }
 0x283   :  { %272 = vmax.xlane.f32.xlu1 %v271_v36 }
 0x286   :  { %v344_v2 = vpop.permute.xlu0 %343 }
 0x310   :  { %v273_v40 = vpop.xlane.xlu1 %272 }
 0x311   :  { %v278_v41 = vrot.slane %v273_v40, %v277_v38  ;;  %v282_v42 = vrot.slane %v273_v40, %v281_v39 }
 0x313   :  { %v285_v43 = vsub.f32 %v251_v33, %v278_v41  ;;  %v286_v44 = vsub.f32 %v254_v31, %v282_v42 }
 0x315   :  { %v287_v45 = vmul.f32 1.442695, %v285_v43  ;;  %v289_v46 = vmul.f32 1.442695, %v286_v44 }
 0x317   :  { %439 = vpow2.f32 %v287_v45 }
 0x318   :  { %441 = vpow2.f32 %v289_v46 }
 0x321   :  { %v440_v47 = vpop.eup %439 }
 0x322   :  { %294 = vperm.xlu1 %437, %v440_v47   ;;  %v442_v48 = vpop.eup %441 }
 0x326   :  { %297 = vperm.xlu1 %437, %v442_v48  }
 0x3a1   :  { %v295_v52 = vpop.permute.xlu1 %294 }
 0x3a2   :  { %v302_v54 = vrot.slane %v295_v52, %v632_v30 }
 0x3a5   :  { %v298_v53 = vpop.permute.xlu1 %297 }
 0x3a6   :  { %v306_v55 = vrot.slane %v298_v53, %v632_v30 }
 0x3a8   :  { %v307_v56 = vsel %vm267_vm3, %v306_v55, %v302_v54 }
 0x3a9   :  { %v309_v57 = vsel %vm270_vm4, %v307_v56, 0.0 }
 0x3aa   :  { %310 = vadd.xlane.f32.xlu1 %v309_v57 }
 0x437   :  { %v311_v58 = vpop.xlane.xlu1 %310 }
 0x438   :  { %443 = vrcp.f32 %v311_v58 }
 0x442   :  { %v444_v59 = vpop.eup %443 }
 0x443   :  { %v313_v60 = vmul.f32 %v444_v59, %v311_v58 }
 0x445   :  { %v314_v62 = vsub.f32 2.0, %v313_v60 }
 0x447   :  { %v315_v63 = vmul.f32 %v444_v59, %v314_v62 }
 0x449   :  { %v320_v0 = vrot.slane %v315_v63, %v277_v38  ;;  %v324_v1 = vrot.slane %v315_v63, %v281_v39 }
 0x44b   :  { %v327_v3 = vmul.f32 %v440_v47, %v320_v0  ;;  %v328_v4 = vmul.f32 %v442_v48, %v324_v1 }
 0x44d   :  { %v347_v5 = vmul.f32 %v337_v61, %v327_v3  ;;  %v348_v6 = vmul.f32 %v344_v2, %v328_v4 }
 0x44f   :  { %352 = vperm.xlu0 %438, %v347_v5   ;;  %355 = vperm.xlu1 %437, %v348_v6  }
 0x4ce   :  { %v356_v7 = vpop.permute.xlu1 %355  ;;  %v353_v8 = vpop.permute.xlu0 %352 }
 0x4cf   :  { %v364_v9 = vrot.slane %v356_v7, %v632_v30  ;;  %v360_v10 = vrot.slane %v353_v8, %v632_v30 }
 0x4d1   :  { %v365_v11 = vsel %vm267_vm3, %v364_v9, %v360_v10 }
 0x4d2   :  { %367 = vst.msk [vmem:[#allocation8] sm:$0x3] %vm270_vm4, %v365_v11 }
 0x4d3   :  { %522 = shalt.err (!%p519_p0)
}
 0x4d4   :  { %s523_s11 = scalar_lea.hbm %s666_s5, 32 }
 0x4d5   :  { %p524_p1 = scmp.ne.s32.totalorder %s666_s5, %s523_s11  ;;  %p527_p2 = scmp.lt.u32.totalorder %s523_s11, %s666_s5 }
 0x4d7   :  { %p529_p3 = pnand %p527_p2, %p524_p1 }
 0x4d9   :  { %532 = shalt.err (!%p529_p3)
}
 0x4da   :  { %377 = dma.vmem_to_hbm [thread:$0]  %s375_s7, 32, %s666_s5, [#allocation4]  }
 0x4db   :  { %537 = dma.done.wait [#allocation4], 32  }
 0x4dc   :  { %538 = vsyncadd [#allocation4], 4294967264 }
 0x4dd   :  { %381 = vsyncpa [#allocation3], 1 }
 0x4de   :  { %382 = vsyncpa [#allocation6], 1 }
 0x4df   :  { %383 = vsyncpa [#allocation4], 1 }

</bundles_post_ra>
